<compile_context>
chip_gen: v5e
topology: v5e:2x2
jax: 0.10.0
libtpu: 0.0.40
codegen_flags: <defaults>
</compile_context>

<pallas_src>
import functools

import jax
import jax.numpy as jnp
from jax import lax
from jax.experimental import pallas as pl
from jax.experimental.pallas import tpu as pltpu


def _choose_tok_tile(seq_len, cap):
    """Largest divisor of seq_len that is <= cap and sublane-friendly."""
    for t in range(min(seq_len, cap), 0, -1):
        if seq_len % t == 0 and (t % 8 == 0 or t == seq_len):
            return t
    return seq_len


def _pick_vmem_limit():
    """64 MiB where physical VMEM allows it, ~3/4 of capacity otherwise."""
    try:
        cap = int(pltpu.get_tpu_info().vmem_capacity_bytes)
        return min(64 * 1024 * 1024, (cap * 3) // 4)
    except Exception:
        return 32 * 1024 * 1024  # conservative, valid on every generation


# --------------------------------------------------------------------------
# Path A: embedding table resident in VMEM, in-kernel row gather.
# --------------------------------------------------------------------------
def _embed_kernel_resident(ids_ref, emb_ref, pe_ref, out_ref, gather_buf,
                           *, tok_tile, seq_len, scale):
    """One grid step = one (batch, token-tile).

    ids_ref    : SMEM (B*S,) int32       — scalar-prefetched token ids
    emb_ref    : VMEM (V, D)             — resident table (constant block idx)
    pe_ref     : VMEM (tok_tile, D)      — per-tile positional-encoding block
    out_ref    : VMEM (1, tok_tile, D)   — dense output slab for this tile
    gather_buf : VMEM (tok_tile, D)      — gathered embedding rows
    """
    b = pl.program_id(0)
    t = pl.program_id(1)
    base = b * seq_len + t * tok_tile

    def gather_row(i, carry):
        tok = ids_ref[base + i]
        gather_buf[pl.ds(i, 1), :] = emb_ref[pl.ds(tok, 1), :]
        return carry

    lax.fori_loop(0, tok_tile, gather_row, 0, unroll=min(tok_tile, 8))

    out_ref[0] = (gather_buf[...].astype(jnp.float32) * scale
                  + pe_ref[...]).astype(out_ref.dtype)


# --------------------------------------------------------------------------
# Path B: table in HBM, manual row DMAs double-buffered across grid steps.
# --------------------------------------------------------------------------
def _embed_kernel_hbm(ids_ref, emb_hbm, pe_ref, out_ref, gather_buf, sem,
                      *, tok_tile, scale):
    """Flattened 1-D grid: pid indexes (batch * token-tile)s.

    ids_ref    : SMEM (B*S,) int32          — scalar-prefetched token ids
    emb_hbm    : ANY/HBM (V, D)             — raw embedding table
    pe_ref     : VMEM (tok_tile, D)         — per-tile positional encoding
    out_ref    : VMEM (1, tok_tile, D)
    gather_buf : VMEM (2*tok_tile, D)       — double-buffered gathered rows
    sem        : DMA semaphores, shape (2,) — one per buffer slot
    """
    pid = pl.program_id(0)
    nsteps = pl.num_programs(0)
    slot = pid % 2

    def issue(step, slot_):
        base = step * tok_tile
        row0 = slot_ * tok_tile

        def body(i, carry):
            tok = ids_ref[base + i]
            pltpu.make_async_copy(
                emb_hbm.at[pl.ds(tok, 1)],
                gather_buf.at[pl.ds(row0 + i, 1)],
                sem.at[slot_],
            ).start()
            return carry

        lax.fori_loop(0, tok_tile, body, 0, unroll=min(tok_tile, 8))

    # Prime slot 0 on the very first step (only step with exposed latency).
    @pl.when(pid == 0)
    def _():
        issue(0, 0)

    # Prefetch the *next* tile's rows into the other slot before computing
    # this one. Grid axis is "arbitrary" (sequential on one core), so pid+1
    # is always the next step and the guard prevents dangling DMAs at the end.
    @pl.when(pid + 1 < nsteps)
    def _():
        issue(pid + 1, 1 - slot)

    off = pl.multiple_of(slot * tok_tile, tok_tile)
    tile_view = gather_buf.at[pl.ds(off, tok_tile)]

    # One collapsed wait: the DMA semaphore counts bytes, and this slot's
    # tok_tile row copies signalled exactly tok_tile*D*itemsize bytes — the
    # size of this (tok_tile, D) descriptor (src/dst only set the byte count).
    pltpu.make_async_copy(tile_view, tile_view, sem.at[slot]).wait()

    out_ref[0] = (tile_view[...].astype(jnp.float32) * scale
                  + pe_ref[...]).astype(out_ref.dtype)


# --------------------------------------------------------------------------
# Wrapper
# --------------------------------------------------------------------------
def transformer_embedding(ids, emb_table, pe, *, tok_tile=None,
                          out_dtype=jnp.float32, force_hbm_gather=False,
                          vmem_table_budget=4 * 1024 * 1024):
    """ids: (B, S) int32; emb_table: (V, D); pe: (max_len, D) -> (B, S, D)."""
    B, S = ids.shape
    V, D = emb_table.shape
    max_len, Dp = pe.shape
    assert D == Dp, "embedding dim mismatch"
    assert S <= max_len, "sequence longer than positional-encoding table"
    scale = float(D) ** 0.5

    if tok_tile is None:
        # Bigger tiles when D is small (amortize per-step overhead, long
        # unmasked vst runs); bounded so tile VMEM stays modest.
        cap = max(8, min(1024, (1 << 19) // max(D, 1)))
        tok_tile = _choose_tok_tile(S, cap)
    assert S % tok_tile == 0
    num_t = S // tok_tile

    ids_flat = jnp.clip(ids.reshape(-1), 0, V - 1).astype(jnp.int32)
    pe_s = pe[:S].astype(jnp.float32)

    table_bytes = V * D * jnp.dtype(emb_table.dtype).itemsize
    use_resident = (not force_hbm_gather) and (table_bytes <= vmem_table_budget)

    vmem_limit = _pick_vmem_limit()

    if use_resident:
        grid = (B, num_t)
        grid_spec = pltpu.PrefetchScalarGridSpec(
            num_scalar_prefetch=1,      # ids_flat -> SMEM, trailing index_map arg
            grid=grid,
            in_specs=[
                # Whole table, constant block index -> DMA'd once, resident.
                pl.BlockSpec((V, D), lambda b, t, ids: (0, 0)),
                # Per-tile PE block (auto-pipelined, VMEM-friendly on v7x).
                pl.BlockSpec((tok_tile, D), lambda b, t, ids: (t, 0)),
            ],
            out_specs=pl.BlockSpec((1, tok_tile, D),
                                   lambda b, t, ids: (b, t, 0)),
            scratch_shapes=[pltpu.VMEM((tok_tile, D), emb_table.dtype)],
        )
        kernel = functools.partial(_embed_kernel_resident,
                                   tok_tile=tok_tile, seq_len=S, scale=scale)
        dims = ("parallel", "parallel")   # independent tiles; v7x can shard
    else:
        grid = (B * num_t,)               # flat grid so "next" tile is pid+1
        grid_spec = pltpu.PrefetchScalarGridSpec(
            num_scalar_prefetch=1,
            grid=grid,
            in_specs=[
                pl.BlockSpec(memory_space=pl.ANY),   # table stays in HBM
                pl.BlockSpec((tok_tile, D),
                             lambda p, ids: (p % num_t, 0)),
            ],
            out_specs=pl.BlockSpec((1, tok_tile, D),
                                   lambda p, ids: (p // num_t, p % num_t, 0)),
            scratch_shapes=[
                pltpu.VMEM((2 * tok_tile, D), emb_table.dtype),  # double buffer
                pltpu.SemaphoreType.DMA((2,)),
            ],
        )
        kernel = functools.partial(_embed_kernel_hbm,
                                   tok_tile=tok_tile, scale=scale)
        # Sequential so the pid+1 prefetch is always valid (no cross-core
        # shard-boundary prefetch / dangling DMAs on v7x megacore).
        dims = ("arbitrary",)

    return pl.pallas_call(
        kernel,
        out_shape=jax.ShapeDtypeStruct((B, S, D), out_dtype),
        grid_spec=grid_spec,
        compiler_params=pltpu.CompilerParams(
            dimension_semantics=dims,
            vmem_limit_bytes=vmem_limit,
        ),
    )(ids_flat, emb_table, pe_s)


def make_positional_encoding(max_len, emb_dim):
    """Exact reproduction of PositionalEmbedding._calc_positional_encoding
    (note: the module uses 10000^(odd_index/d) for the cos divisor — kept
    intentionally to match the reference module, not the canonical paper)."""
    pos = jnp.arange(max_len, dtype=jnp.float32)[:, None]
    even = jnp.arange(0, emb_dim, 2, dtype=jnp.float32)
    even = jnp.power(10000.0, even / emb_dim)
    odd = jnp.arange(1, emb_dim, 2, dtype=jnp.float32)
    odd = jnp.power(10000.0, odd / emb_dim)
    pe = jnp.zeros((max_len, emb_dim), dtype=jnp.float32)
    pe = pe.at[:, 0::2].set(jnp.sin(pos / even))
    pe = pe.at[:, 1::2].set(jnp.cos(pos / odd))
    return pe


if __name__ == "__main__":
    # Small, deterministic configuration.
    vocab_size = 50
    emb_dim = 128
    max_len = 16
    batch_size = 2
    seq_len = 8

    key = jax.random.PRNGKey(0)
    k_emb, k_ids = jax.random.split(key)

    # nn.Embedding default init: N(0, 1); padding_idx=None.
    emb_table = jax.random.normal(k_emb, (vocab_size, emb_dim), dtype=jnp.float32)
    pe = make_positional_encoding(max_len, emb_dim)
    ids = jax.random.randint(k_ids, (batch_size, seq_len), 0, vocab_size,
                             dtype=jnp.int32)

    # Pure-JAX reference (dropout in eval mode is identity).
    ref = emb_table[ids] * (emb_dim ** 0.5) + pe[:seq_len][None, :, :]

    # Path A: VMEM-resident table + in-kernel gather (default for small vocab).
    out_resident = jax.block_until_ready(transformer_embedding(ids, emb_table, pe))
    assert out_resident.shape == (batch_size, seq_len, emb_dim)
    assert jnp.allclose(out_resident, ref, atol=1e-5, rtol=1e-5)

    # Path B: HBM table + cross-step double-buffered DMA gather (big-vocab path).
    out_hbm = jax.block_until_ready(
        transformer_embedding(ids, emb_table, pe, force_hbm_gather=True))
    assert out_hbm.shape == (batch_size, seq_len, emb_dim)
    assert jnp.allclose(out_hbm, ref, atol=1e-5, rtol=1e-5)

    print("KERNEL_OK")
</pallas_src>

<mosaic_0001>
module attributes {stable_mosaic.version = 11 : i64} {
  func.func @_embed_kernel_resident(%arg0: i32, %arg1: i32, %arg2: memref<16xi32, #tpu.memory_space<smem>>, %arg3: memref<50x128xf32, #tpu.memory_space<vmem>>, %arg4: memref<8x128xf32, #tpu.memory_space<vmem>>, %arg5: memref<1x8x128xf32, #tpu.memory_space<vmem>>, %arg6: memref<8x128xf32, #tpu.memory_space<vmem>>) attributes {dimension_semantics = [#tpu.dimension_semantics<parallel>, #tpu.dimension_semantics<parallel>], iteration_bounds = array<i64: 2, 1>, scalar_prefetch = 1 : i64, scratch_operands = 1 : i64, tpu.core_type = #tpu.core_type<tc>, window_params = [{pipeline_mode = #tpu.pipeline_mode<synchronous>, transform_indices = @transform_0, window_bounds = array<i64: 50, 128>}, {transform_indices = @transform_1, window_bounds = array<i64: 8, 128>}, {transform_indices = @transform_2, window_bounds = array<i64: 1, 8, 128>}]} {
    %c8_i32 = arith.constant 8 : i32
    %0 = arith.muli %arg0, %c8_i32 : i32
    %c8_i32_0 = arith.constant 8 : i32
    %1 = arith.muli %arg1, %c8_i32_0 : i32
    %2 = arith.addi %0, %1 : i32
    %c0_i32 = arith.constant 0 : i32
    %3 = arith.addi %2, %c0_i32 : i32
    %4 = arith.index_cast %3 : i32 to index
    %5 = memref.load %arg2[%4] : memref<16xi32, #tpu.memory_space<smem>>
    %6 = arith.index_cast %5 : i32 to index
    %c0 = arith.constant 0 : index
    %7 = vector.load %arg3[%6, %c0] : memref<50x128xf32, #tpu.memory_space<vmem>>, vector<1x128xf32>
    %8 = arith.index_cast %c0_i32 : i32 to index
    %c0_1 = arith.constant 0 : index
    %9 = vector.load %arg6[%8, %c0_1] : memref<8x128xf32, #tpu.memory_space<vmem>>, vector<1x128xf32>
    tpu.vector_store %arg6[%8, %c0_1], %7 {strides = array<i32>} : memref<8x128xf32, #tpu.memory_space<vmem>>, vector<1x128xf32>,
    %c1_i32 = arith.constant 1 : i32
    %10 = arith.addi %2, %c1_i32 : i32
    %11 = arith.index_cast %10 : i32 to index
    %12 = memref.load %arg2[%11] : memref<16xi32, #tpu.memory_space<smem>>
    %13 = arith.index_cast %12 : i32 to index
    %c0_2 = arith.constant 0 : index
    %14 = vector.load %arg3[%13, %c0_2] : memref<50x128xf32, #tpu.memory_space<vmem>>, vector<1x128xf32>
    %15 = arith.index_cast %c1_i32 : i32 to index
    %c0_3 = arith.constant 0 : index
    %16 = vector.load %arg6[%15, %c0_3] : memref<8x128xf32, #tpu.memory_space<vmem>>, vector<1x128xf32>
    tpu.vector_store %arg6[%15, %c0_3], %14 {strides = array<i32>} : memref<8x128xf32, #tpu.memory_space<vmem>>, vector<1x128xf32>,
    %c2_i32 = arith.constant 2 : i32
    %17 = arith.addi %2, %c2_i32 : i32
    %18 = arith.index_cast %17 : i32 to index
    %19 = memref.load %arg2[%18] : memref<16xi32, #tpu.memory_space<smem>>
    %20 = arith.index_cast %19 : i32 to index
    %c0_4 = arith.constant 0 : index
    %21 = vector.load %arg3[%20, %c0_4] : memref<50x128xf32, #tpu.memory_space<vmem>>, vector<1x128xf32>
    %22 = arith.index_cast %c2_i32 : i32 to index
    %c0_5 = arith.constant 0 : index
    %23 = vector.load %arg6[%22, %c0_5] : memref<8x128xf32, #tpu.memory_space<vmem>>, vector<1x128xf32>
    tpu.vector_store %arg6[%22, %c0_5], %21 {strides = array<i32>} : memref<8x128xf32, #tpu.memory_space<vmem>>, vector<1x128xf32>,
    %c3_i32 = arith.constant 3 : i32
    %24 = arith.addi %2, %c3_i32 : i32
    %25 = arith.index_cast %24 : i32 to index
    %26 = memref.load %arg2[%25] : memref<16xi32, #tpu.memory_space<smem>>
    %27 = arith.index_cast %26 : i32 to index
    %c0_6 = arith.constant 0 : index
    %28 = vector.load %arg3[%27, %c0_6] : memref<50x128xf32, #tpu.memory_space<vmem>>, vector<1x128xf32>
    %29 = arith.index_cast %c3_i32 : i32 to index
    %c0_7 = arith.constant 0 : index
    %30 = vector.load %arg6[%29, %c0_7] : memref<8x128xf32, #tpu.memory_space<vmem>>, vector<1x128xf32>
    tpu.vector_store %arg6[%29, %c0_7], %28 {strides = array<i32>} : memref<8x128xf32, #tpu.memory_space<vmem>>, vector<1x128xf32>,
    %c4_i32 = arith.constant 4 : i32
    %31 = arith.addi %2, %c4_i32 : i32
    %32 = arith.index_cast %31 : i32 to index
    %33 = memref.load %arg2[%32] : memref<16xi32, #tpu.memory_space<smem>>
    %34 = arith.index_cast %33 : i32 to index
    %c0_8 = arith.constant 0 : index
    %35 = vector.load %arg3[%34, %c0_8] : memref<50x128xf32, #tpu.memory_space<vmem>>, vector<1x128xf32>
    %36 = arith.index_cast %c4_i32 : i32 to index
    %c0_9 = arith.constant 0 : index
    %37 = vector.load %arg6[%36, %c0_9] : memref<8x128xf32, #tpu.memory_space<vmem>>, vector<1x128xf32>
    tpu.vector_store %arg6[%36, %c0_9], %35 {strides = array<i32>} : memref<8x128xf32, #tpu.memory_space<vmem>>, vector<1x128xf32>,
    %c5_i32 = arith.constant 5 : i32
    %38 = arith.addi %2, %c5_i32 : i32
    %39 = arith.index_cast %38 : i32 to index
    %40 = memref.load %arg2[%39] : memref<16xi32, #tpu.memory_space<smem>>
    %41 = arith.index_cast %40 : i32 to index
    %c0_10 = arith.constant 0 : index
    %42 = vector.load %arg3[%41, %c0_10] : memref<50x128xf32, #tpu.memory_space<vmem>>, vector<1x128xf32>
    %43 = arith.index_cast %c5_i32 : i32 to index
    %c0_11 = arith.constant 0 : index
    %44 = vector.load %arg6[%43, %c0_11] : memref<8x128xf32, #tpu.memory_space<vmem>>, vector<1x128xf32>
    tpu.vector_store %arg6[%43, %c0_11], %42 {strides = array<i32>} : memref<8x128xf32, #tpu.memory_space<vmem>>, vector<1x128xf32>,
    %c6_i32 = arith.constant 6 : i32
    %45 = arith.addi %2, %c6_i32 : i32
    %46 = arith.index_cast %45 : i32 to index
    %47 = memref.load %arg2[%46] : memref<16xi32, #tpu.memory_space<smem>>
    %48 = arith.index_cast %47 : i32 to index
    %c0_12 = arith.constant 0 : index
    %49 = vector.load %arg3[%48, %c0_12] : memref<50x128xf32, #tpu.memory_space<vmem>>, vector<1x128xf32>
    %50 = arith.index_cast %c6_i32 : i32 to index
    %c0_13 = arith.constant 0 : index
    %51 = vector.load %arg6[%50, %c0_13] : memref<8x128xf32, #tpu.memory_space<vmem>>, vector<1x128xf32>
    tpu.vector_store %arg6[%50, %c0_13], %49 {strides = array<i32>} : memref<8x128xf32, #tpu.memory_space<vmem>>, vector<1x128xf32>,
    %c7_i32 = arith.constant 7 : i32
    %52 = arith.addi %2, %c7_i32 : i32
    %53 = arith.index_cast %52 : i32 to index
    %54 = memref.load %arg2[%53] : memref<16xi32, #tpu.memory_space<smem>>
    %55 = arith.index_cast %54 : i32 to index
    %c0_14 = arith.constant 0 : index
    %56 = vector.load %arg3[%55, %c0_14] : memref<50x128xf32, #tpu.memory_space<vmem>>, vector<1x128xf32>
    %57 = arith.index_cast %c7_i32 : i32 to index
    %c0_15 = arith.constant 0 : index
    %58 = vector.load %arg6[%57, %c0_15] : memref<8x128xf32, #tpu.memory_space<vmem>>, vector<1x128xf32>
    tpu.vector_store %arg6[%57, %c0_15], %56 {strides = array<i32>} : memref<8x128xf32, #tpu.memory_space<vmem>>, vector<1x128xf32>,
    %c8_i32_16 = arith.constant 8 : i32
    %c0_17 = arith.constant 0 : index
    %c0_18 = arith.constant 0 : index
    %59 = vector.load %arg6[%c0_17, %c0_18] : memref<8x128xf32, #tpu.memory_space<vmem>>, vector<8x128xf32>
    %cst = arith.constant 11.3137083 : f32
    %60 = vector.broadcast %cst : f32 to vector<8x128xf32>
    %61 = arith.mulf %59, %60 : vector<8x128xf32>
    %c0_19 = arith.constant 0 : index
    %c0_20 = arith.constant 0 : index
    %62 = vector.load %arg4[%c0_19, %c0_20] : memref<8x128xf32, #tpu.memory_space<vmem>>, vector<8x128xf32>
    %63 = arith.addf %61, %62 : vector<8x128xf32>
    %c0_21 = arith.constant 0 : index
    %c0_22 = arith.constant 0 : index
    %c0_23 = arith.constant 0 : index
    %64 = vector.load %arg5[%c0_21, %c0_22, %c0_23] : memref<1x8x128xf32, #tpu.memory_space<vmem>>, vector<1x8x128xf32>
    %65 = vector.shape_cast %64 : vector<1x8x128xf32> to vector<8x128xf32>
    %66 = vector.shape_cast %63 : vector<8x128xf32> to vector<1x8x128xf32>
    tpu.vector_store %arg5[%c0_21, %c0_22, %c0_23], %66 {strides = array<i32>} : memref<1x8x128xf32, #tpu.memory_space<vmem>>, vector<1x8x128xf32>,
    return
  }
  func.func @transform_0(%arg0: i32, %arg1: i32, %arg2: memref<16xi32, #tpu.memory_space<smem>>) -> (i32, i32) {
    %c0_i32 = arith.constant 0 : i32
    %c0_i32_0 = arith.constant 0 : i32
    %c0_i32_1 = arith.constant 0 : i32
    return %c0_i32, %c0_i32_0 : i32, i32
  }
  func.func @transform_1(%arg0: i32, %arg1: i32, %arg2: memref<16xi32, #tpu.memory_space<smem>>) -> (i32, i32) {
    %c0_i32 = arith.constant 0 : i32
    %c0_i32_0 = arith.constant 0 : i32
    return %arg1, %c0_i32 : i32, i32
  }
  func.func @transform_2(%arg0: i32, %arg1: i32, %arg2: memref<16xi32, #tpu.memory_space<smem>>) -> (i32, i32, i32) {
    %c0_i32 = arith.constant 0 : i32
    %c0_i32_0 = arith.constant 0 : i32
    return %arg0, %arg1, %c0_i32 : i32, i32, i32
  }
}

</mosaic_0001>

<bundles_post_ra>
// kernel: tpu_custom_call.1
= control target key start
LH: loop header
LB: loop body
LE: loop exit
PB: predicated region body
PF: predicated region fallthrough
CT: control target
= control target key end

     0   :  { %s591_s15 = smov [#allocation4]   ;;  %s750_s0 = inlined_call_operand.hbm [shape: s32[16], index: 0, kind: input, shape index: {}]   ;;  %s751_s1 = inlined_call_operand.hbm [shape: f32[50,128], index: 1, kind: input, shape index: {}]   ;;  %s752_s2 = inlined_call_operand.hbm [shape: f32[8,128], index: 2, kind: input, shape index: {}]   ;;  %s753_s3 = inlined_call_operand.hbm [shape: f32[2,8,128], index: 3, kind: output, shape index: {}]  }
   0x1   :  { %s9_s14 = sshll.u32 %s750_s0, 4  ;;  %s10_s14 = int_to_ptr.hbm [resolvable:$true] %s9_s14 }
   0x2   :  { %12 = dma.hbm_to_smem %s10_s14, 16, %s591_s15, [#allocation3] }
   0x3   :  { %553 = dma.done.wait [#allocation3], 16 }
   0x4   :  { %554 = vsyncadd [#allocation3], 4294967280 }
   0x5   :  { %15 = sfence }
   0x6   :  { %16 = vsyncpa [#allocation6], 0 }
   0x7   :  { %17 = vsyncpa [#allocation9], 0 }
   0x8   :  { %18 = vsyncpa [#allocation7], 0 }
   0x9   :  { %20 = vsyncpa [#allocation7 + $0x1], 0  ;;  %s619_s16 = smov 0   ;;  %s621_s17 = smov 0  }
   0xa   :  { %s623_s18 = smov 0   ;;  %s625_s19 = smov 0  }
   0xb   :  { %s627_s20 = smov 0   ;;  %s629_s0 = smov 0  }
   0xc LB: > { %s336_s21 = sadd.s32 4294967295, %s589_s0   ;;  %s337_s22 = sadd.s32 4294967294, %s589_s0   ;;  %s589_s0 = sphi %s629_s0, %s26_s0   ;;  %s585_s20 = sphi %s627_s20, %s762_s20   ;;  %s581_s19 = sphi %s625_s19, %s761_s19   ;;  %s577_s18 = sphi %s623_s18, %s760_s18   ;;  %s573_s17 = sphi %s621_s17, %s759_s17   ;;  %s569_s16 = sphi %s619_s16, %s758_s16  }
   0xd   : > { %s38_s23 = sadd.s32 1, %s585_s20  ;;  %s94_s24 = sadd.s32 1, %s577_s18 }
   0xe   : > { %p40_p0 = scmp.ge.s32.totalorder %s38_s23, 2  ;;  %p104_p1 = scmp.ne.s32.totalorder %s577_s18, %s573_s17 }
   0xf   : > { %p105_p2 = scmp.eq.s32.totalorder %s336_s21, 1  ;;  %p110_p3 = scmp.ne.s32.totalorder %s573_s17, %s569_s16 }
  0x10   : > { %s764_s23 = smov (%p40_p0, %s38_s23), 0  ;;  %p111_p5 = scmp.eq.s32.totalorder %s337_s22, 1 }
  0x11   : > { %p659_p4 = por %p105_p2, %p104_p1  ;;  %s89_s26 = ssub.s32 %s585_s20, %s764_s23 }
  0x12   : > { %p338_p6 = scmp.ge.s32.totalorder %s589_s0, 1  ;;  %p92_p7 = scmp.eq.s32.totalorder %s89_s26, 0 }
  0x13   : > { %p666_p8 = por %p111_p5, %p110_p3  ;;  %p118_p9 = scmp.lt.s32.totalorder %s589_s0, 3 }
  0x14   : > { %s672_s28 = scalar_select %p92_p7, %s577_s18, %s94_s24  }
  0x15   : > { %p674_p10 = pnand %p338_p6, %p118_p9  ;;  %p678_p11 = scmp.eq.s32.totalorder %s336_s21, 0 }
  0x16   : > { %s129_s6 = sshll.u32 %s751_s1, 4  ;;  %s592_s7 = smov [#allocation5]   ;;  %s130_s6 = int_to_ptr.hbm [resolvable:$true] %s129_s6 }
  0x17   : > { %p360_p12 = pneg %p674_p10  ;;  %s131_s8 = sshll.u32 %s592_s7, 4  ;;  %s132_s8 = int_to_ptr.vmem [resolvable:$true] %s131_s8 }
  0x18   : > { %s146_s11 = sshll.u32 %s752_s2, 4  ;;  %s593_s12 = smov 128   ;;  %s147_s11 = int_to_ptr.hbm [resolvable:$true] %s146_s11 }
  0x19   : > { %p361_p13 = pnand %p678_p11, %p360_p12  ;;  %s594_s13 = smov 8  }
  0x1a   : > { %s595_s14 = smov [#allocation8]   ;;  %161 = sbr.rel (%p674_p10) target bundleno = 66 (0x42), region = 28 }
  0x1b   : > { %363 = dma.hbm_to_vmem [thread:$0]  (!%p361_p13), %s130_s6, 896, %s132_s8, [#allocation6], %s593_s12, %s593_s12, %s594_s13  }
  0x1c   : > { %s148_s15 = sshll.u32 %s595_s14, 4  ;;  %s149_s15 = int_to_ptr.vmem [resolvable:$true] %s148_s15 }
  0x1d   : > { %366 = dma.hbm_to_vmem [thread:$0]  (!%p361_p13), %s147_s11, 128, %s149_s15, [#allocation9]  }
  0x1f   : > { %556 = dma.done.wait (%p678_p11), [#allocation6], 896  }
  0x20   : > { %558 = vsyncadd (%p678_p11), [#allocation6], 4294966400 }
  0x21   : > { %560 = dma.done.wait (%p678_p11), [#allocation9], 128  }
  0x22   : > { %562 = vsyncadd (%p678_p11), [#allocation9], 4294967168  ;;  %s703_s21 = sshll.u32 %s581_s19, 3  ;;  %v228_v9 = vld [vmem:[#allocation8] sm:$0xff] }
  0x23   : > { %s187_s22 = sld [smem:[#allocation4 + %s703_s21]]  ;;  %s191_s24 = sadd.s32 1, %s703_s21 }
  0x24   : > { %s192_s26 = sld [smem:[#allocation4 + %s191_s24]]  ;;  %s196_s29 = sadd.s32 2, %s703_s21 }
  0x25   : > { %s197_s4 = sld [smem:[#allocation4 + %s196_s29]]  ;;  %s201_s5 = sadd.s32 3, %s703_s21 }
  0x26   : > { %s202_s6 = sld [smem:[#allocation4 + %s201_s5]]  ;;  %s206_s30 = sadd.s32 4, %s703_s21 }
  0x27   : > { %s207_s7 = sld [smem:[#allocation4 + %s206_s30]]  ;;  %s211_s8 = sadd.s32 5, %s703_s21 }
  0x28   : > { %s212_s19 = sld [smem:[#allocation4 + %s211_s8]]  ;;  %s216_s9 = sadd.s32 6, %s703_s21 }
  0x29   : > { %s217_s10 = sld [smem:[#allocation4 + %s216_s9]]  ;;  %s188_s11 = scalar_lea.vmem [#allocation5], %s187_s22 }
  0x2a   : > { %v189_v0 = vld [vmem:[%s188_s11] sm:$0x1]  ;;  %s221_s12 = sadd.s32 7, %s703_s21  ;;  %s193_s13 = scalar_lea.vmem [#allocation5], %s192_s26 }
  0x2b   : > { %190 = vst [vmem:[#allocation2] sm:$0x1] %v189_v0  ;;  %v194_v1 = vld [vmem:[%s193_s13] sm:$0x1]  ;;  %s222_s14 = sld [smem:[#allocation4 + %s221_s12]]  ;;  %s198_s15 = scalar_lea.vmem [#allocation5], %s197_s4 }
  0x2c   : > { %195 = vst [vmem:[#allocation2 + $0x1] sm:$0x1] %v194_v1  ;;  %v199_v2 = vld [vmem:[%s198_s15] sm:$0x1]  ;;  %s203_s24 = scalar_lea.vmem [#allocation5], %s202_s6  ;;  %s181_s26 = sand.u32 1, %s573_s17  }
  0x2d   : > { %200 = vst [vmem:[#allocation2 + $0x2] sm:$0x1] %v199_v2  ;;  %v204_v3 = vld [vmem:[%s203_s24] sm:$0x1]  ;;  %s208_s29 = scalar_lea.vmem [#allocation5], %s207_s7  ;;  %s344_s4 = sshll.u32 %s181_s26, 3 }
  0x2e   : > { %205 = vst [vmem:[#allocation2 + $0x3] sm:$0x1] %v204_v3  ;;  %v209_v4 = vld [vmem:[%s208_s29] sm:$0x1]  ;;  %s213_s5 = scalar_lea.vmem [#allocation5], %s212_s19  ;;  %s243_s6 = scalar_lea.hbm %s753_s3, %s703_s21 }
  0x2f   : > { %210 = vst [vmem:[#allocation2 + $0x4] sm:$0x1] %v209_v4  ;;  %v214_v5 = vld [vmem:[%s213_s5] sm:$0x1]  ;;  %s218_s22 = scalar_lea.vmem [#allocation5], %s217_s10  ;;  %s183_s7 = scalar_lea.vmem [#allocation10], %s344_s4 }
  0x30   : > { %215 = vst [vmem:[#allocation2 + $0x5] sm:$0x1] %v214_v5  ;;  %v219_v6 = vld [vmem:[%s218_s22] sm:$0x1]  ;;  %s245_s11 = sshll.u32 %s183_s7, 4  ;;  %s247_s19 = sshll.u32 %s243_s6, 4  ;;  %s246_s11 = int_to_ptr.vmem [resolvable:$true] %s245_s11  ;;  %s248_s19 = int_to_ptr.hbm [resolvable:$true] %s247_s19 }
  0x31   : > { %220 = vst [vmem:[#allocation2 + $0x6] sm:$0x1] %v219_v6  ;;  %s223_s30 = scalar_lea.vmem [#allocation5], %s222_s14  ;;  %s232_s10 = scalar_lea.sflag [#allocation7], %s181_s26 }
  0x32   : > { %v224_v7 = vld [vmem:[%s223_s30] sm:$0x1]  ;;  %s515_s12 = sshra.s32 %s248_s19, 4  ;;  %s521_s15 = scalar_lea.hbm %s753_s3, 16  ;;  %s516_s12 = int_to_ptr.hbm [resolvable:$true] %s515_s12 }
  0x33   : > { %225 = vst [vmem:[#allocation2 + $0x7] sm:$0x1] %v224_v7  ;;  %s517_s13 = scalar_lea.hbm %s516_s12, 8  ;;  %p522_p3 = scmp.lt.s32.totalorder %s516_s12, %s753_s3 }
  0x34   : > { %p518_p0 = scmp.ne.s32.totalorder %s516_s12, %s517_s13  ;;  %p523_p5 = scmp.lt.s32.totalorder %s521_s15, %s517_s13 }
  0x36   : > { %p519_p1 = pnand %p518_p0, %p659_p4  ;;  %p524_p6 = por %p523_p5, %p522_p3 }
  0x38   : > { %p520_p2 = pneg %p519_p1 }
  0x3a   : > { %v226_v8 = vld [vmem:[#allocation2] sm:$0xff]  ;;  %p525_p7 = pnand %p524_p6, %p520_p2 }
  0x3b   : > { %v227_v10 = vmul.f32 11.313708, %v226_v8 }
  0x3d   : > { %v229_v11 = vadd.f32 %v228_v9, %v227_v10 }
  0x3f   : > { %230 = vst [vmem:[%s183_s7] sm:$0xff] %v229_v11 }
  0x40   : > { %528 = shalt.err (!%p525_p7)
}
  0x41   : > { %358 = dma.vmem_to_hbm [thread:$0]  (%p659_p4), %s246_s11, 128, %s248_s19, %s232_s10  }
  0x42 PF: > { %p375_p9 = scmp.ge.s32.totalorder %s589_s0, 2  ;;  %s259_s5 = sand.u32 1, %s569_s16  }
  0x43   : > { %s260_s22 = scalar_lea.sflag [#allocation7], %s259_s5 }
  0x44   : > { %p368_p10 = pnand %p375_p9, %p666_p8 }
  0x46   : > { %p369_p11 = pneg %p368_p10 }
  0x48   : > { %564 = dma.done.wait (%p369_p11), %s260_s22, 128  }
  0x49   : > { %566 = vsyncadd (%p369_p11), %s260_s22, 4294967168  ;;  %s26_s0 = sadd.s32 1, %s589_s0   ;;  %s758_s16 = smov %s573_s17 }
  0x4a   : > { %p23_p12 = scmp.ge.s32.totalorder %s26_s0, 4   ;;  %s759_s17 = smov %s577_s18 }
  0x4b   : > { %s760_s18 = smov %s672_s28  ;;  %s761_s19 = smov %s585_s20 }
  0x4c   : > { %s762_s20 = smov %s764_s23  ;;  %25 = sbr.rel (!%p23_p12) target bundleno = 12 (0xc), region = 78 }
  0x51   :  { %266 = vsyncpa [#allocation6], 1 }
  0x52   :  { %268 = vsyncpa [#allocation6 + $0x1], 1 }
  0x53   :  { %269 = vsyncpa [#allocation9], 1 }
  0x54   :  { %270 = vsyncpa [#allocation7], 1 }
  0x55   :  { %272 = vsyncpa [#allocation7 + $0x1], 1 }

</bundles_post_ra>
